<compile_context>
chip_gen: v7x
topology: tpu7x:2x2x1
jax: 0.10.0
libtpu: 0.0.40
codegen_flags: <defaults>
</compile_context>

<pallas_src>
import functools

import jax
import jax.numpy as jnp
from jax.experimental import pallas as pl
from jax.experimental.pallas import tpu as pltpu


def _round_up(n, m):
    return ((n + m - 1) // m) * m


def nested_mlp_kernel(x_ref, w1_ref, b1_ref, w2_ref, b2_ref, w3_ref, b3_ref,
                      o_ref):
    """out = W3 @ relu(W2 @ relu(W1 @ x^T + b1) + b2) + b3, stored as (tb, 16).

    x_ref : (tb, 20) native row-major input tile (whatever dtype lives in HBM).
    w*_ref: PyTorch-layout (out, in) weights (MXU operand dtype).
    b*_ref: (out, 1) f32 bias columns.
    o_ref : (tb, 16) f32 output tile (native row-major).
    """
    xb = x_ref[...].astype(w1_ref.dtype)   # cast in VMEM -> no extra HBM pass

    # Layer 1, batch-on-lanes: (64, 20) x (tb, 20)^T -> (64, tb).
    # Transposed-RHS dot_general (same form as q @ k^T): no materialized x^T.
    h1 = jax.lax.dot_general(w1_ref[...], xb, (((1,), (1,)), ((), ())),
                             preferred_element_type=jnp.float32)
    h1 = jnp.maximum(h1 + b1_ref[...], 0.0)          # bias + ReLU in f32 (v5e-safe)
    h1 = h1.astype(w2_ref.dtype)

    # Layer 2: (32, 64) @ (64, tb) -> (32, tb).
    h2 = jnp.dot(w2_ref[...], h1, preferred_element_type=jnp.float32)
    h2 = jnp.maximum(h2 + b2_ref[...], 0.0)
    h2 = h2.astype(w3_ref.dtype)

    # Layer 3: (16, 32) @ (32, tb) -> (16, tb); bias added while lane-dense.
    ot = jnp.dot(w3_ref[...], h2, preferred_element_type=jnp.float32)
    ot = ot + b3_ref[...]

    # Single small in-kernel transpose back to the native (tb, 16) layout.
    o_ref[...] = ot.T.astype(o_ref.dtype)


def prepare_params(w1, b1, w2, b2, w3, b3, matmul_dtype=jnp.float32):
    """One-time param prep (hoisted out of the call path).

    Weights stay in PyTorch (out, in) layout (exactly what the batch-on-lanes
    kernel wants -- no transpose); biases become (out, 1) f32 columns; weights
    are cast to the MXU operand dtype.
    """
    return (
        w1.astype(matmul_dtype), b1[:, None].astype(jnp.float32),
        w2.astype(matmul_dtype), b2[:, None].astype(jnp.float32),
        w3.astype(matmul_dtype), b3[:, None].astype(jnp.float32),
    )


@functools.partial(jax.jit, static_argnames=("block_b",))
def nested_mlp(x, params, *, block_b=8192):
    """x: (B, 20), f32 or bf16. params: prepare_params(...). Returns (B, 16) f32."""
    w1, b1, w2, b2, w3, b3 = params
    B = x.shape[0]

    # ---- batch tiling: lane-friendly multiple of 128, capped at block_b, and
    # split into >= 2 grid steps when the batch allows (v7x has 2 TensorCores).
    block_b = _round_up(block_b, 128)
    tb = _round_up(max(B, 1), 128)
    if tb > block_b:
        tb = block_b
    elif B > 128:
        tb = min(tb, _round_up(pl.cdiv(B, 2), 128))
    grid_n = pl.cdiv(B, tb)
    b_pad = grid_n * tb

    # Tiny batches (< one tile) are zero-padded so every block is in bounds;
    # this is at most one (tb, 20) tile.  For B >= tb no pad is done: the last
    # (ragged) block reads undefined rows which are dropped by the final [:B].
    if B < tb:
        x = jnp.pad(x, ((0, tb - B), (0, 0)))

    out = pl.pallas_call(
        nested_mlp_kernel,
        out_shape=jax.ShapeDtypeStruct((b_pad, 16), jnp.float32),
        grid=(grid_n,),
        in_specs=[
            # x streams along the batch axis in its native layout.
            pl.BlockSpec((tb, 20), lambda i: (i, 0)),
            # Weights / biases: full arrays, same block every step -> stay
            # VMEM-resident across the whole grid.
            pl.BlockSpec(w1.shape, lambda i: (0, 0)),
            pl.BlockSpec(b1.shape, lambda i: (0, 0)),
            pl.BlockSpec(w2.shape, lambda i: (0, 0)),
            pl.BlockSpec(b2.shape, lambda i: (0, 0)),
            pl.BlockSpec(w3.shape, lambda i: (0, 0)),
            pl.BlockSpec(b3.shape, lambda i: (0, 0)),
        ],
        out_specs=pl.BlockSpec((tb, 16), lambda i: (i, 0)),
        compiler_params=pltpu.CompilerParams(
            dimension_semantics=("parallel",),      # megacore sharding on v7x
            vmem_limit_bytes=64 * 1024 * 1024,
        ),
    )(x, w1, b1, w2, b2, w3, b3)

    return out[:B]


def init_params(key):
    """Deterministic PyTorch-like init: U(-1/sqrt(fan_in), 1/sqrt(fan_in))."""
    ks = jax.random.split(key, 6)

    def lin(kw, kb, fan_in, fan_out):
        bound = 1.0 / jnp.sqrt(fan_in)
        w = jax.random.uniform(kw, (fan_out, fan_in), jnp.float32, -bound, bound)
        b = jax.random.uniform(kb, (fan_out,), jnp.float32, -bound, bound)
        return w, b

    w1, b1 = lin(ks[0], ks[1], 20, 64)
    w2, b2 = lin(ks[2], ks[3], 64, 32)
    w3, b3 = lin(ks[4], ks[5], 32, 16)
    return w1, b1, w2, b2, w3, b3


if __name__ == "__main__":
    key = jax.random.PRNGKey(0)
    kx, kp = jax.random.split(key)
    # X = torch.rand(2, 20) -> uniform [0, 1)
    x = jax.random.uniform(kx, (2, 20), jnp.float32)
    w1, b1, w2, b2, w3, b3 = init_params(kp)

    # Pure-JAX reference.
    ref = jnp.maximum(x @ w1.T + b1, 0.0)
    ref = jnp.maximum(ref @ w2.T + b2, 0.0)
    ref = ref @ w3.T + b3

    # f32 MXU-operand path.
    params_f32 = prepare_params(w1, b1, w2, b2, w3, b3, matmul_dtype=jnp.float32)
    out = jax.block_until_ready(nested_mlp(x, params_f32))
    assert out.shape == (2, 16)
    assert jnp.allclose(out, ref, atol=1e-4), "f32 kernel mismatch vs reference"

    # bf16 MXU-operand path: x arrives bf16 in HBM (upstream cast), halving the
    # dominant read stream on v6e/v7x; accumulation stays f32 in-kernel.
    params_bf16 = prepare_params(w1, b1, w2, b2, w3, b3, matmul_dtype=jnp.bfloat16)
    out_bf16 = jax.block_until_ready(
        nested_mlp(x.astype(jnp.bfloat16), params_bf16))
    assert out_bf16.shape == (2, 16)
    assert jnp.allclose(out_bf16, ref, atol=1e-1), "bf16 kernel mismatch vs reference"

    print("KERNEL_OK")
</pallas_src>

<mosaic_0001>
module attributes {stable_mosaic.version = 11 : i64} {
  func.func @nested_mlp_kernel(%arg0: i32, %arg1: memref<128x20xf32, #tpu.memory_space<vmem>>, %arg2: memref<64x20xf32, #tpu.memory_space<vmem>>, %arg3: memref<64x1xf32, #tpu.memory_space<vmem>>, %arg4: memref<32x64xf32, #tpu.memory_space<vmem>>, %arg5: memref<32x1xf32, #tpu.memory_space<vmem>>, %arg6: memref<16x32xf32, #tpu.memory_space<vmem>>, %arg7: memref<16x1xf32, #tpu.memory_space<vmem>>, %arg8: memref<128x16xf32, #tpu.memory_space<vmem>>) attributes {dimension_semantics = [#tpu.dimension_semantics<parallel>], iteration_bounds = array<i64: 1>, scalar_prefetch = 0 : i64, scratch_operands = 0 : i64, tpu.core_type = #tpu.core_type<tc>, window_params = [{transform_indices = @transform_0, window_bounds = array<i64: 128, 20>}, {pipeline_mode = #tpu.pipeline_mode<synchronous>, transform_indices = @transform_1, window_bounds = array<i64: 64, 20>}, {pipeline_mode = #tpu.pipeline_mode<synchronous>, transform_indices = @transform_2, window_bounds = array<i64: 64, 1>}, {pipeline_mode = #tpu.pipeline_mode<synchronous>, transform_indices = @transform_3, window_bounds = array<i64: 32, 64>}, {pipeline_mode = #tpu.pipeline_mode<synchronous>, transform_indices = @transform_4, window_bounds = array<i64: 32, 1>}, {pipeline_mode = #tpu.pipeline_mode<synchronous>, transform_indices = @transform_5, window_bounds = array<i64: 16, 32>}, {pipeline_mode = #tpu.pipeline_mode<synchronous>, transform_indices = @transform_6, window_bounds = array<i64: 16, 1>}, {transform_indices = @transform_7, window_bounds = array<i64: 128, 16>}]} {
    %c0 = arith.constant 0 : index
    %c0_0 = arith.constant 0 : index
    %0 = vector.load %arg1[%c0, %c0_0] : memref<128x20xf32, #tpu.memory_space<vmem>>, vector<128x20xf32>
    %c0_1 = arith.constant 0 : index
    %c0_2 = arith.constant 0 : index
    %1 = vector.load %arg2[%c0_1, %c0_2] : memref<64x20xf32, #tpu.memory_space<vmem>>, vector<64x20xf32>
    %cst = arith.constant dense<0.000000e+00> : vector<64x128xf32>
    %2 = tpu.matmul %1, %0, %cst {dimension_numbers = #tpu.dot_dimension_numbers<[1], [1], [0], [0], [0, 0, 1, 0], [], []>} : vector<64x20xf32>, vector<128x20xf32>, vector<64x128xf32> -> vector<64x128xf32>
    %c0_3 = arith.constant 0 : index
    %c0_4 = arith.constant 0 : index
    %3 = vector.load %arg3[%c0_3, %c0_4] : memref<64x1xf32, #tpu.memory_space<vmem>>, vector<64x1xf32>
    %4 = vector.broadcast %3 : vector<64x1xf32> to vector<64x128xf32>
    %5 = arith.addf %2, %4 : vector<64x128xf32>
    %cst_5 = arith.constant 0.000000e+00 : f32
    %6 = vector.broadcast %cst_5 : f32 to vector<64x128xf32>
    %7 = arith.maximumf %5, %6 : vector<64x128xf32>
    %c0_6 = arith.constant 0 : index
    %c0_7 = arith.constant 0 : index
    %8 = vector.load %arg4[%c0_6, %c0_7] : memref<32x64xf32, #tpu.memory_space<vmem>>, vector<32x64xf32>
    %cst_8 = arith.constant dense<0.000000e+00> : vector<32x128xf32>
    %9 = tpu.matmul %8, %7, %cst_8 {dimension_numbers = #tpu.dot_dimension_numbers<[1], [0], [0], [1], [0, 0, 1, 1], [], []>} : vector<32x64xf32>, vector<64x128xf32>, vector<32x128xf32> -> vector<32x128xf32>
    %c0_9 = arith.constant 0 : index
    %c0_10 = arith.constant 0 : index
    %10 = vector.load %arg5[%c0_9, %c0_10] : memref<32x1xf32, #tpu.memory_space<vmem>>, vector<32x1xf32>
    %11 = vector.broadcast %10 : vector<32x1xf32> to vector<32x128xf32>
    %12 = arith.addf %9, %11 : vector<32x128xf32>
    %cst_11 = arith.constant 0.000000e+00 : f32
    %13 = vector.broadcast %cst_11 : f32 to vector<32x128xf32>
    %14 = arith.maximumf %12, %13 : vector<32x128xf32>
    %c0_12 = arith.constant 0 : index
    %c0_13 = arith.constant 0 : index
    %15 = vector.load %arg6[%c0_12, %c0_13] : memref<16x32xf32, #tpu.memory_space<vmem>>, vector<16x32xf32>
    %cst_14 = arith.constant dense<0.000000e+00> : vector<16x128xf32>
    %16 = tpu.matmul %15, %14, %cst_14 {dimension_numbers = #tpu.dot_dimension_numbers<[1], [0], [0], [1], [0, 0, 1, 1], [], []>} : vector<16x32xf32>, vector<32x128xf32>, vector<16x128xf32> -> vector<16x128xf32>
    %c0_15 = arith.constant 0 : index
    %c0_16 = arith.constant 0 : index
    %17 = vector.load %arg7[%c0_15, %c0_16] : memref<16x1xf32, #tpu.memory_space<vmem>>, vector<16x1xf32>
    %18 = vector.broadcast %17 : vector<16x1xf32> to vector<16x128xf32>
    %19 = arith.addf %16, %18 : vector<16x128xf32>
    %20 = tpu.transpose %19, [1, 0] : vector<16x128xf32> -> vector<128x16xf32>
    %c0_17 = arith.constant 0 : index
    %c0_18 = arith.constant 0 : index
    %21 = vector.load %arg8[%c0_17, %c0_18] : memref<128x16xf32, #tpu.memory_space<vmem>>, vector<128x16xf32>
    tpu.vector_store %arg8[%c0_17, %c0_18], %20 {strides = array<i32>} : memref<128x16xf32, #tpu.memory_space<vmem>>, vector<128x16xf32>,
    return
  }
  func.func @transform_0(%arg0: i32) -> (i32, i32) {
    %c0_i32 = arith.constant 0 : i32
    %c0_i32_0 = arith.constant 0 : i32
    return %arg0, %c0_i32 : i32, i32
  }
  func.func @transform_1(%arg0: i32) -> (i32, i32) {
    %c0_i32 = arith.constant 0 : i32
    %c0_i32_0 = arith.constant 0 : i32
    %c0_i32_1 = arith.constant 0 : i32
    return %c0_i32, %c0_i32_0 : i32, i32
  }
  func.func @transform_2(%arg0: i32) -> (i32, i32) {
    %c0_i32 = arith.constant 0 : i32
    %c0_i32_0 = arith.constant 0 : i32
    %c0_i32_1 = arith.constant 0 : i32
    return %c0_i32, %c0_i32_0 : i32, i32
  }
  func.func @transform_3(%arg0: i32) -> (i32, i32) {
    %c0_i32 = arith.constant 0 : i32
    %c0_i32_0 = arith.constant 0 : i32
    %c0_i32_1 = arith.constant 0 : i32
    return %c0_i32, %c0_i32_0 : i32, i32
  }
  func.func @transform_4(%arg0: i32) -> (i32, i32) {
    %c0_i32 = arith.constant 0 : i32
    %c0_i32_0 = arith.constant 0 : i32
    %c0_i32_1 = arith.constant 0 : i32
    return %c0_i32, %c0_i32_0 : i32, i32
  }
  func.func @transform_5(%arg0: i32) -> (i32, i32) {
    %c0_i32 = arith.constant 0 : i32
    %c0_i32_0 = arith.constant 0 : i32
    %c0_i32_1 = arith.constant 0 : i32
    return %c0_i32, %c0_i32_0 : i32, i32
  }
  func.func @transform_6(%arg0: i32) -> (i32, i32) {
    %c0_i32 = arith.constant 0 : i32
    %c0_i32_0 = arith.constant 0 : i32
    %c0_i32_1 = arith.constant 0 : i32
    return %c0_i32, %c0_i32_0 : i32, i32
  }
  func.func @transform_7(%arg0: i32) -> (i32, i32) {
    %c0_i32 = arith.constant 0 : i32
    %c0_i32_0 = arith.constant 0 : i32
    return %arg0, %c0_i32 : i32, i32
  }
}

</mosaic_0001>

<bundles_post_ra>
// kernel: nested_mlp.1
= control target key start
LH: loop header
LB: loop body
LE: loop exit
PB: predicated region body
PF: predicated region fallthrough
CT: control target
= control target key end

     0   :  { %12 = vsyncpa [#allocation3], 0  ;;  %s1356_s0 = inlined_call_operand.hbm [shape: f32[128,20], index: 0, kind: input, shape index: {}]   ;;  %s1357_s1 = inlined_call_operand.hbm [shape: f32[64,20], index: 1, kind: input, shape index: {}]   ;;  %s1358_s2 = inlined_call_operand.hbm [shape: f32[64,1], index: 2, kind: input, shape index: {}]   ;;  %s1359_s3 = inlined_call_operand.hbm [shape: f32[32,64], index: 3, kind: input, shape index: {}]   ;;  %s1360_s4 = inlined_call_operand.hbm [shape: f32[32,1], index: 4, kind: input, shape index: {}]   ;;  %s1361_s5 = inlined_call_operand.hbm [shape: f32[16,32], index: 5, kind: input, shape index: {}]   ;;  %s1362_s6 = inlined_call_operand.hbm [shape: f32[16,1], index: 6, kind: input, shape index: {}]   ;;  %s1363_s7 = inlined_call_operand.hbm [shape: f32[128,16], index: 7, kind: output, shape index: {}]  }
   0x1   :  { %13 = vsyncpa [#allocation6], 0 }
   0x2   :  { %14 = vsyncpa [#allocation9], 0 }
   0x3   :  { %15 = vsyncpa [#allocation12], 0 }
   0x4   :  { %16 = vsyncpa [#allocation4], 0  ;;  %s1096_s24 = smov [#allocation5]   ;;  %s1097_s26 = smov [#allocation8]  }
   0x5   :  { %s34_s25 = sshll.u32 %s1096_s24, 4  ;;  %s58_s27 = sshll.u32 %s1097_s26, 4  ;;  %s35_s25 = int_to_ptr.vmem [resolvable:$true] %s34_s25  ;;  %s1147_s27 = int_to_ptr.vmem [resolvable:$true] %s58_s27 }
   0x6   :  { %s910_s30 = scalar_lea.hbm %s1357_s1, 1024 }
   0x7   :  { %p911_p0 = scmp.ne.s32.totalorder %s1357_s1, %s910_s30  ;;  %p914_p1 = scmp.lt.u32.totalorder %s910_s30, %s1357_s1 }
   0x9   :  { %p916_p2 = pnand %p914_p1, %p911_p0 }
   0xb   :  { %919 = shalt.err (!%p916_p2)
}
   0xc   :  { %s920_s12 = scalar_lea.vmem %s35_s25, 1024  ;;  %p925_p4 = scmp.lt.s32.totalorder %s35_s25, %s35_s25 }
   0xd   :  { %p921_p3 = scmp.ne.s32.totalorder %s35_s25, %s920_s12  ;;  %p926_p5 = scmp.lt.s32.totalorder %s920_s12, %s920_s12 }
   0xf   :  { %p927_p6 = por %p926_p5, %p925_p4 }
  0x11   :  { %p928_p7 = pnand %p927_p6, %p921_p3 }
  0x13   :  { %931 = shalt.err (!%p928_p7)
}
  0x14   :  { %s1098_s13 = smov 128   ;;  %s1099_s14 = smov 8  }
  0x15   :  { %40 = dma.hbm_to_vmem [thread:$0]  %s1357_s1, 1024, %s35_s25, [#allocation6], %s1098_s13, %s1098_s13, %s1099_s14  }
  0x16   :  { %s932_s19 = scalar_lea.hbm %s1359_s3, 512 }
  0x17   :  { %p933_p8 = scmp.ne.s32.totalorder %s1359_s3, %s932_s19  ;;  %p936_p9 = scmp.lt.u32.totalorder %s932_s19, %s1359_s3 }
  0x19   :  { %p938_p10 = pnand %p936_p9, %p933_p8 }
  0x1b   :  { %941 = shalt.err (!%p938_p10)
}
  0x1c   :  { %s942_s24 = scalar_lea.vmem %s1147_s27, 512  ;;  %p947_p12 = scmp.lt.s32.totalorder %s1147_s27, %s1147_s27 }
  0x1d   :  { %p943_p11 = scmp.ne.s32.totalorder %s1147_s27, %s942_s24  ;;  %p948_p13 = scmp.lt.s32.totalorder %s942_s24, %s942_s24 }
  0x1f   :  { %p949_p0 = por %p948_p13, %p947_p12 }
  0x21   :  { %p950_p1 = pnand %p949_p0, %p943_p11 }
  0x23   :  { %953 = shalt.err (!%p950_p1)
}
  0x24   :  { %64 = dma.hbm_to_vmem [thread:$0]  %s1359_s3, 512, %s1147_s27, [#allocation9], %s1098_s13, %s1098_s13, %s1099_s14  }
  0x25   :  { %s1100_s26 = smov [#allocation11]   ;;  %s1101_s29 = smov [#allocation2]  }
  0x26   :  { %s82_s28 = sshll.u32 %s1100_s26, 4  ;;  %s22_s30 = sshll.u32 %s1101_s29, 4  ;;  %s83_s28 = int_to_ptr.vmem [resolvable:$true] %s82_s28  ;;  %s1184_s30 = int_to_ptr.vmem [resolvable:$true] %s22_s30 }
  0x27   :  { %s954_s10 = scalar_lea.hbm %s1361_s5, 256 }
  0x28   :  { %p955_p2 = scmp.ne.s32.totalorder %s1361_s5, %s954_s10  ;;  %p958_p3 = scmp.lt.u32.totalorder %s954_s10, %s1361_s5 }
  0x2a   :  { %p960_p4 = pnand %p958_p3, %p955_p2 }
  0x2c   :  { %963 = shalt.err (!%p960_p4)
}
  0x2d   :  { %s964_s3 = scalar_lea.vmem %s83_s28, 256  ;;  %p969_p6 = scmp.lt.s32.totalorder %s83_s28, %s83_s28 }
  0x2e   :  { %p965_p5 = scmp.ne.s32.totalorder %s83_s28, %s964_s3  ;;  %p970_p7 = scmp.lt.s32.totalorder %s964_s3, %s964_s3 }
  0x30   :  { %p971_p8 = por %p970_p7, %p969_p6 }
  0x32   :  { %p972_p9 = pnand %p971_p8, %p965_p5 }
  0x34   :  { %975 = shalt.err (!%p972_p9)
}
  0x35   :  { %88 = dma.hbm_to_vmem [thread:$0]  %s1361_s5, 256, %s83_s28, [#allocation12], %s1098_s13, %s1098_s13, %s1099_s14  }
  0x36   :  { %s976_s20 = scalar_lea.hbm %s1356_s0, 2048 }
  0x37   :  { %p977_p10 = scmp.ne.s32.totalorder %s1356_s0, %s976_s20  ;;  %p980_p11 = scmp.lt.u32.totalorder %s976_s20, %s1356_s0 }
  0x39   :  { %p982_p12 = pnand %p980_p11, %p977_p10 }
  0x3b   :  { %985 = shalt.err (!%p982_p12)
}
  0x3c   :  { %s986_s1 = scalar_lea.vmem %s1184_s30, 2048  ;;  %p991_p0 = scmp.lt.s32.totalorder %s1184_s30, %s1184_s30 }
  0x3d   :  { %p987_p13 = scmp.ne.s32.totalorder %s1184_s30, %s986_s1  ;;  %p992_p1 = scmp.lt.s32.totalorder %s986_s1, %s986_s1 }
  0x3f   :  { %p993_p2 = por %p992_p1, %p991_p0 }
  0x41   :  { %p994_p3 = pnand %p993_p2, %p987_p13 }
  0x43   :  { %997 = shalt.err (!%p994_p3)
}
  0x44   :  { %28 = dma.hbm_to_vmem [thread:$0]  %s1356_s0, 2048, %s1184_s30, [#allocation3], %s1098_s13, %s1098_s13, %s1099_s14  }
  0x45   :  { %s1102_s26 = smov [#allocation7]   ;;  %s1103_s29 = smov [#allocation10]  }
  0x46   :  { %s46_s28 = sshll.u32 %s1102_s26, 4  ;;  %s70_s8 = sshll.u32 %s1103_s29, 4  ;;  %s47_s28 = int_to_ptr.vmem [resolvable:$true] %s46_s28  ;;  %s1221_s8 = int_to_ptr.vmem [resolvable:$true] %s70_s8 }
  0x47   :  { %s998_s11 = scalar_lea.hbm %s1358_s2, 1024 }
  0x48   :  { %p999_p4 = scmp.ne.s32.totalorder %s1358_s2, %s998_s11  ;;  %p1002_p5 = scmp.lt.u32.totalorder %s998_s11, %s1358_s2 }
  0x4a   :  { %p1004_p6 = pnand %p1002_p5, %p999_p4 }
  0x4c   :  { %1007 = shalt.err (!%p1004_p6)
}
  0x4d   :  { %s1008_s0 = scalar_lea.vmem %s47_s28, 1024  ;;  %p1013_p8 = scmp.lt.s32.totalorder %s47_s28, %s47_s28 }
  0x4e   :  { %p1009_p7 = scmp.ne.s32.totalorder %s47_s28, %s1008_s0  ;;  %p1014_p9 = scmp.lt.s32.totalorder %s1008_s0, %s1008_s0 }
  0x50   :  { %p1015_p10 = por %p1014_p9, %p1013_p8 }
  0x52   :  { %p1016_p11 = pnand %p1015_p10, %p1009_p7 }
  0x54   :  { %1019 = shalt.err (!%p1016_p11)
}
  0x55   :  { %52 = dma.hbm_to_vmem [thread:$0]  %s1358_s2, 1024, %s47_s28, [#allocation6], %s1098_s13, %s1098_s13, %s1099_s14  }
  0x56   :  { %s1020_s19 = scalar_lea.hbm %s1360_s4, 512 }
  0x57   :  { %p1021_p12 = scmp.ne.s32.totalorder %s1360_s4, %s1020_s19  ;;  %p1024_p13 = scmp.lt.u32.totalorder %s1020_s19, %s1360_s4 }
  0x59   :  { %p1026_p0 = pnand %p1024_p13, %p1021_p12 }
  0x5b   :  { %1029 = shalt.err (!%p1026_p0)
}
  0x5c   :  { %s1030_s24 = scalar_lea.vmem %s1221_s8, 512  ;;  %p1035_p2 = scmp.lt.s32.totalorder %s1221_s8, %s1221_s8 }
  0x5d   :  { %p1031_p1 = scmp.ne.s32.totalorder %s1221_s8, %s1030_s24  ;;  %p1036_p3 = scmp.lt.s32.totalorder %s1030_s24, %s1030_s24 }
  0x5f   :  { %p1037_p4 = por %p1036_p3, %p1035_p2 }
  0x61   :  { %p1038_p5 = pnand %p1037_p4, %p1031_p1 }
  0x63   :  { %1041 = shalt.err (!%p1038_p5)
}
  0x64   :  { %76 = dma.hbm_to_vmem [thread:$0]  %s1360_s4, 512, %s1221_s8, [#allocation9], %s1098_s13, %s1098_s13, %s1099_s14  }
  0x65   :  { %s1104_s5 = smov [#allocation13]   ;;  %s1042_s29 = scalar_lea.hbm %s1362_s6, 256 }
  0x66   :  { %s94_s25 = sshll.u32 %s1104_s5, 4  ;;  %p1043_p6 = scmp.ne.s32.totalorder %s1362_s6, %s1042_s29  ;;  %s95_s25 = int_to_ptr.vmem [resolvable:$true] %s94_s25 }
  0x67   :  { %p1046_p7 = scmp.lt.u32.totalorder %s1042_s29, %s1362_s6 }
  0x69   :  { %p1048_p8 = pnand %p1046_p7, %p1043_p6 }
  0x6b   :  { %1051 = shalt.err (!%p1048_p8)
}
  0x6c   :  { %s1052_s15 = scalar_lea.vmem %s95_s25, 256  ;;  %p1057_p10 = scmp.lt.s32.totalorder %s95_s25, %s95_s25 }
  0x6d   :  { %p1053_p9 = scmp.ne.s32.totalorder %s95_s25, %s1052_s15  ;;  %p1058_p11 = scmp.lt.s32.totalorder %s1052_s15, %s1052_s15 }
  0x6f   :  { %p1059_p12 = por %p1058_p11, %p1057_p10 }
  0x71   :  { %p1060_p13 = pnand %p1059_p12, %p1053_p9 }
  0x73   :  { %1063 = shalt.err (!%p1060_p13)
}
  0x74   :  { %100 = dma.hbm_to_vmem [thread:$0]  %s1362_s6, 256, %s95_s25, [#allocation12], %s1098_s13, %s1098_s13, %s1099_s14  }
  0x75   :  { %1086 = dma.done.wait [#allocation3], 2048  }
  0x76   :  { %1087 = vsyncadd [#allocation3], 4294965248 }
  0x77   :  { %1088 = dma.done.wait [#allocation6], 2048  }
  0x78   :  { %1089 = vsyncadd [#allocation6], 4294965248 }
  0x79   :  { %1090 = dma.done.wait [#allocation9], 1024  }
  0x7a   :  { %1091 = vsyncadd [#allocation9], 4294966272 }
  0x7b   :  { %1092 = dma.done.wait [#allocation12], 512  }
  0x7c   :  { %1093 = vsyncadd [#allocation12], 4294966784  ;;  %v1105_v0 = vmov 0   ;;  %vm194_vm0 = vcmask 162816   ;;  %v122_v2 = vld [vmem:[#allocation2] sm:$0xff]  ;;  %v123_v3 = vld [vmem:[#allocation2 + $0x8] sm:$0xff] }
  0x7d   :  { %908 = vset.pattern.permute.xlu0 %v1105_v0  ;;  %909 = vset.pattern.permute.xlu1 %v1105_v0  ;;  %vm1275_vm1 = vmpackc.low %vm194_vm0, %vm194_vm0  ;;  %v124_v4 = vld [vmem:[#allocation2 + $0x10] sm:$0xff]  ;;  %v824_v5 = vpack.c.bf16 %v123_v3, %v122_v2  ;;  %v125_v6 = vld [vmem:[#allocation2 + $0x18] sm:$0xff]  ;;  %vm408_vm2 = vcmask 523264   ;;  %vm524_vm3 = vcmask 261120   ;;  %vm638_vm4 = vcmask 130048   ;;  %s1106_s6 = smov [#allocation14]  }
  0x7e   :  { %v830_v7 = vpack.c.bf16 %v125_v6, %v124_v4  ;;  %v138_v8 = vld [vmem:[#allocation5] sm:$0xff]  ;;  %v127_v10 = vld [vmem:[#allocation2 + $0x28] sm:$0xff]  ;;  %v148_v12 = vld [vmem:[#allocation7 + $0x10] sm:$0xff]  ;;  %s660_s16 = sshll.u32 %s1106_s6, 4  ;;  %s661_s16 = int_to_ptr.vmem [resolvable:$true] %s660_s16 }
  0x7f   :  { %826 = vmatprep.subr.msk.bf16.mxu0 %vm1275_vm1, %v824_v5  ;;  %v126_v9 = vld [vmem:[#allocation2 + $0x20] sm:$0xff]  ;;  %779 = vmatprep.mubr.msk.f32.mxu0 %vm194_vm0, %v138_v8  ;;  %v147_v14 = vld [vmem:[#allocation7 + $0x8] sm:$0xff]  ;;  %v149_v15 = vld [vmem:[#allocation7 + $0x18] sm:$0xff]  ;;  %s1064_s3 = scalar_lea.vmem %s661_s16, 2048  ;;  %p1069_p1 = scmp.lt.s32.totalorder %s661_s16, %s661_s16 }
  0x80   :  { %829 = vmatpush3.bf16.xpose.msk.msra.mxu0 %vm1275_vm1, %v824_v5  ;;  %v146_v11 = vld [vmem:[#allocation7] sm:$0xff]  ;;  %v836_v13 = vpack.c.bf16 %v127_v10, %v126_v9  ;;  %166 = vperm.xlu1 %909, %v148_v12   ;;  %v128_v16 = vld [vmem:[#allocation2 + $0x30] sm:$0xff]  ;;  %v129_v17 = vld [vmem:[#allocation2 + $0x38] sm:$0xff]  ;;  %p1065_p0 = scmp.ne.s32.totalorder %s661_s16, %s1064_s3  ;;  %p1070_p2 = scmp.lt.s32.totalorder %s1064_s3, %s1064_s3 }
  0x81   :  { %832 = vmatprep.subr.msk.bf16.mxu0 %vm1275_vm1, %v830_v7  ;;  %156 = vperm.xlu0 %908, %v146_v11   ;;  %v150_v18 = vld [vmem:[#allocation7 + $0x20] sm:$0xff]  ;;  %v151_v19 = vld [vmem:[#allocation7 + $0x28] sm:$0xff]  ;;  %v842_v20 = vpack.c.bf16 %v129_v17, %v128_v16  ;;  %v152_v21 = vld [vmem:[#allocation7 + $0x30] sm:$0xff] }
  0x82   :  { %v153_v22 = vld [vmem:[#allocation7 + $0x38] sm:$0xff]  ;;  %v130_v23 = vld [vmem:[#allocation2 + $0x40] sm:$0xff]  ;;  %v131_v24 = vld [vmem:[#allocation2 + $0x48] sm:$0xff]  ;;  %p1071_p3 = por %p1070_p2, %p1069_p1 }
  0x83   :  { %v384_v25 = vld [vmem:[#allocation10] sm:$0xff]  ;;  %v385_v26 = vld [vmem:[#allocation10 + $0x8] sm:$0xff]  ;;  %v848_v27 = vpack.c.bf16 %v131_v24, %v130_v23  ;;  %v386_v28 = vld [vmem:[#allocation10 + $0x10] sm:$0xff] }
  0x84   :  { %171 = vperm.xlu1 %909, %v149_v15   ;;  %v387_v29 = vld [vmem:[#allocation10 + $0x18] sm:$0xff]  ;;  %v132_v30 = vld [vmem:[#allocation2 + $0x50] sm:$0xff]  ;;  %v134_v35 = vld [vmem:[#allocation2 + $0x60] sm:$0xff]  ;;  %p1072_p4 = pnand %p1071_p3, %p1065_p0 }
  0x85   :  { %161 = vperm.xlu0 %908, %v147_v14   ;;  %v133_v31 = vld [vmem:[#allocation2 + $0x58] sm:$0xff]  ;;  %v512_v32 = vld [vmem:[#allocation13] sm:$0xff]  ;;  %v135_v36 = vld [vmem:[#allocation2 + $0x68] sm:$0xff] }
  0x86   :  { %v513_v33 = vld [vmem:[#allocation13 + $0x8] sm:$0xff]  ;;  %v854_v34 = vpack.c.bf16 %v133_v31, %v132_v30  ;;  %v860_v37 = vpack.c.bf16 %v135_v36, %v134_v35  ;;  %v136_v38 = vld [vmem:[#allocation2 + $0x70] sm:$0xff]  ;;  %v139_v41 = vld [vmem:[#allocation5 + $0x8] sm:$0xff] }
  0x87   :  { %v137_v39 = vld [vmem:[#allocation2 + $0x78] sm:$0xff]  ;;  %v140_v42 = vld [vmem:[#allocation5 + $0x10] sm:$0xff]  ;;  %v142_v44 = vld [vmem:[#allocation5 + $0x20] sm:$0xff] }
  0x88   :  { %835 = vmatpush3.bf16.xpose.msk.msra.mxu0 %vm1275_vm1, %v830_v7  ;;  %181 = vperm.xlu1 %909, %v151_v19   ;;  %v866_v40 = vpack.c.bf16 %v137_v39, %v136_v38  ;;  %v141_v43 = vld [vmem:[#allocation5 + $0x18] sm:$0xff]  ;;  %v143_v45 = vld [vmem:[#allocation5 + $0x28] sm:$0xff]  ;;  %v144_v46 = vld [vmem:[#allocation5 + $0x30] sm:$0xff] }
  0x89   :  { %838 = vmatprep.subr.msk.bf16.mxu0 %vm1275_vm1, %v836_v13  ;;  %176 = vperm.xlu0 %908, %v150_v18   ;;  %v145_v47 = vld [vmem:[#allocation5 + $0x38] sm:$0xff]  ;;  %v380_v48 = vld [vmem:[#allocation8] sm:$0xff] }
  0x8a   :  { %807 = vmatprep.mubr.msk.f32.mxu1 %vm408_vm2, %v380_v48  ;;  %v383_v23 = vld [vmem:[#allocation8 + $0x18] sm:$0xff]  ;;  %v510_v24 = vld [vmem:[#allocation11] sm:$0xff] }
  0x8c   :  { %191 = vperm.xlu1 %909, %v153_v22   ;;  %v382_v22 = vld [vmem:[#allocation8 + $0x10] sm:$0xff] }
  0x8d   :  { %186 = vperm.xlu0 %908, %v152_v21   ;;  %v381_v21 = vld [vmem:[#allocation8 + $0x8] sm:$0xff] }
  0x90   :  { %841 = vmatpush3.bf16.xpose.msk.msra.mxu0 %vm1275_vm1, %v836_v13  ;;  %395 = vperm.xlu1 %909, %v385_v26  }
  0x91   :  { %844 = vmatprep.subr.msk.bf16.mxu0 %vm1275_vm1, %v842_v20  ;;  %390 = vperm.xlu0 %908, %v384_v25  }
  0x94   :  { %405 = vperm.xlu1 %909, %v387_v29  }
  0x95   :  { %400 = vperm.xlu0 %908, %v386_v28  }
  0x98   :  { %847 = vmatpush3.bf16.xpose.msk.msra.mxu0 %vm1275_vm1, %v842_v20  ;;  %521 = vperm.xlu1 %909, %v513_v33  }
  0x99   :  { %850 = vmatprep.subr.msk.bf16.mxu0 %vm1275_vm1, %v848_v27  ;;  %516 = vperm.xlu0 %908, %v512_v32  }
  0xa0   :  { %853 = vmatpush3.bf16.xpose.msk.msra.mxu0 %vm1275_vm1, %v848_v27 }
  0xa1   :  { %856 = vmatprep.subr.msk.bf16.mxu0 %vm1275_vm1, %v854_v34 }
  0xa8   :  { %859 = vmatpush3.bf16.xpose.msk.msra.mxu0 %vm1275_vm1, %v854_v34 }
  0xa9   :  { %862 = vmatprep.subr.msk.bf16.mxu0 %vm1275_vm1, %v860_v37 }
  0xb0   :  { %865 = vmatpush3.bf16.xpose.msk.msra.mxu0 %vm1275_vm1, %v860_v37 }
  0xb1   :  { %868 = vmatprep.subr.msk.bf16.mxu0 %vm1275_vm1, %v866_v40 }
  0xb8   :  { %871 = vmatpush3.bf16.xpose.msk.msra.mxu0 %vm1275_vm1, %v866_v40 }
  0xbf   :  { %780 = vmatmul.mubr.msk.f32.vlgmr.msra.gmra.mrb[0].mxu0 %vm194_vm0, %v139_v41 }
  0xc0   :  { %782 = vmatprep.mubr.msk.f32.mxu0 %vm194_vm0, %v140_v42 }
  0xc3   :  { %783 = vmatmul.mubr.msk.f32.gmra.mrb[2].mxu0 %vm194_vm0, %v141_v43  ;;  %v511_v43 = vld [vmem:[#allocation11 + $0x8] sm:$0xff] }
  0xc4   :  { %785 = vmatprep.mubr.msk.f32.mxu0 %vm194_vm0, %v142_v44 }
  0xc7   :  { %786 = vmatmul.mubr.msk.f32.gmra.mrb[4].mxu0 %vm194_vm0, %v143_v45 }
  0xc8   :  { %788 = vmatprep.mubr.msk.f32.mxu0 %vm194_vm0, %v144_v46 }
  0xcb   :  { %789 = vmatmul.mubr.msk.f32.gmra.mrb[6].mxu0 %vm194_vm0, %v145_v47 }
  0xff   :  { %v167_v50 = vpop.permute.xlu1 %166 }
 0x100   :  { %v157_v49 = vpop.permute.xlu0 %156 }
 0x103   :  { %v172_v52 = vpop.permute.xlu1 %171 }
 0x104   :  { %v162_v51 = vpop.permute.xlu0 %161 }
 0x107   :  { %v182_v62 = vpop.permute.xlu1 %181 }
 0x108   :  { %v177_v1 = vpop.permute.xlu0 %176 }
 0x10b   :  { %v192_v10 = vpop.permute.xlu1 %191 }
 0x10c   :  { %v187_v13 = vpop.permute.xlu0 %186 }
 0x10f   :  { %v396_v25 = vpop.permute.xlu1 %395 }
 0x110   :  { %v391_v26 = vpop.permute.xlu0 %390 }
 0x113   :  { %v406_v32 = vpop.permute.xlu1 %405 }
 0x114   :  { %v401_v35 = vpop.permute.xlu0 %400 }
 0x117   :  { %v522_v48 = vpop.permute.xlu1 %521 }
 0x118   :  { %v517_v45 = vpop.permute.xlu0 %516 }
 0x192   :  { %v781_v53 = vpop.f32.mrb[0].mxu0 }
 0x193   :  { %v339_v54 = vadd.f32 %v781_v53, %v162_v51  ;;  %v333_v55 = vpop.f32.mrb[1].mxu0 }
 0x194   :  { %v334_v56 = vadd.f32 %v333_v55, %v157_v49 }
 0x195   :  { %v373_v57 = vmax.f32 %v339_v54, 0.0 }
 0x196   :  { %v372_v58 = vmax.f32 %v334_v56, 0.0  ;;  %v784_v59 = vpop.f32.mrb[2].mxu0 }
 0x197   :  { %v349_v60 = vadd.f32 %v784_v59, %v172_v52  ;;  %v343_v61 = vpop.f32.mrb[3].mxu0 }
 0x198   :  { %v344_v63 = vadd.f32 %v343_v61, %v167_v50  ;;  %v872_v0 = vpack.c.bf16 %v373_v57, %v372_v58 }
 0x199   :  { %v375_v2 = vmax.f32 %v349_v60, 0.0 }
 0x19a   :  { %v374_v3 = vmax.f32 %v344_v63, 0.0  ;;  %v787_v4 = vpop.f32.mrb[4].mxu0  ;;  %873 = vmatprep.subr.bf16.mxu1 %v872_v0 }
 0x19b   :  { %v359_v5 = vadd.f32 %v787_v4, %v182_v62  ;;  %v353_v6 = vpop.f32.mrb[5].mxu0  ;;  %875 = vmatpush3.bf16.msra.mxu1 %v872_v0 }
 0x19c   :  { %v876_v7 = vpack.c.bf16 %v375_v2, %v374_v3  ;;  %v354_v8 = vadd.f32 %v353_v6, %v177_v1 }
 0x19d   :  { %v377_v9 = vmax.f32 %v359_v5, 0.0 }
 0x19e   :  { %v376_v11 = vmax.f32 %v354_v8, 0.0  ;;  %v790_v12 = vpop.f32.mrb[6].mxu0  ;;  %877 = vmatprep.subr.bf16.mxu1 %v876_v7 }
 0x19f   :  { %v369_v14 = vadd.f32 %v790_v12, %v192_v10  ;;  %v363_v15 = vpop.f32.mrb[7].mxu0  ;;  %879 = vmatpush3.bf16.msra.mxu1 %v876_v7 }
 0x1a0   :  { %v880_v16 = vpack.c.bf16 %v377_v9, %v376_v11  ;;  %v364_v17 = vadd.f32 %v363_v15, %v187_v13 }
 0x1a1   :  { %v379_v18 = vmax.f32 %v369_v14, 0.0 }
 0x1a2   :  { %v378_v19 = vmax.f32 %v364_v17, 0.0  ;;  %881 = vmatprep.subr.bf16.mxu1 %v880_v16 }
 0x1a3   :  { %883 = vmatpush3.bf16.msra.mxu1 %v880_v16 }
 0x1a4   :  { %v884_v20 = vpack.c.bf16 %v379_v18, %v378_v19 }
 0x1a6   :  { %885 = vmatprep.subr.bf16.mxu1 %v884_v20 }
 0x1a7   :  { %887 = vmatpush3.bf16.msra.mxu1 %v884_v20 }
 0x1aa   :  { %808 = vmatmul.mubr.msk.f32.vlgmr.msra.gmra.mrb[0].mxu1 %vm408_vm2, %v381_v21 }
 0x1ab   :  { %810 = vmatprep.mubr.msk.f32.mxu1 %vm408_vm2, %v382_v22 }
 0x1ae   :  { %811 = vmatmul.mubr.msk.f32.gmra.mrb[2].mxu1 %vm408_vm2, %v383_v23 }
 0x1af   :  { %821 = vmatprep.mubr.msk.f32.mxu1 %vm524_vm3, %v510_v24 }
 0x27d   :  { %v809_v27 = vpop.f32.mrb[0].mxu1 }
 0x27e   :  { %v493_v28 = vadd.f32 %v809_v27, %v396_v25  ;;  %v487_v29 = vpop.f32.mrb[1].mxu1 }
 0x27f   :  { %v488_v30 = vadd.f32 %v487_v29, %v391_v26 }
 0x280   :  { %v507_v31 = vmax.f32 %v493_v28, 0.0 }
 0x281   :  { %v506_v33 = vmax.f32 %v488_v30, 0.0  ;;  %v812_v34 = vpop.f32.mrb[2].mxu1 }
 0x282   :  { %v503_v36 = vadd.f32 %v812_v34, %v406_v32  ;;  %v497_v37 = vpop.f32.mrb[3].mxu1 }
 0x283   :  { %v888_v38 = vpack.c.bf16 %v507_v31, %v506_v33  ;;  %v498_v39 = vadd.f32 %v497_v37, %v401_v35 }
 0x284   :  { %v509_v40 = vmax.f32 %v503_v36, 0.0 }
 0x285   :  { %v508_v41 = vmax.f32 %v498_v39, 0.0  ;;  %889 = vmatprep.subr.bf16.mxu1 %v888_v38 }
 0x286   :  { %891 = vmatpush3.bf16.msra.mxu1 %v888_v38 }
 0x287   :  { %v892_v42 = vpack.c.bf16 %v509_v40, %v508_v41 }
 0x289   :  { %893 = vmatprep.subr.bf16.mxu1 %v892_v42 }
 0x28a   :  { %895 = vmatpush3.bf16.msra.mxu1 %v892_v42 }
 0x28d   :  { %822 = vmatmul.mubr.msk.f32.vlgmr.msra.gmra.mrb[4].mxu1 %vm524_vm3, %v511_v43 }
 0x360   :  { %v823_v44 = vpop.f32.mrb[4].mxu1 }
 0x361   :  { %v597_v46 = vpop.f32.mrb[5].mxu1  ;;  %v603_v49 = vadd.f32 %v823_v44, %v522_v48 }
 0x362   :  { %v598_v47 = vadd.f32 %v597_v46, %v517_v45 }
 0x364   :  { %606 = vxpose.xlu0.b32.start [1/2] (short) %v598_v47, 128 }
 0x368   :  { %607 = vxpose.xlu0.b32.end [2/2] (short) %v603_v49, 128 }
 0x3e4   :  { %v622_v50 = vpop.trf.xlu0 }
 0x3e5   :  { %639 = vst.msk [vmem:[#allocation14] sm:$0xff] %vm638_vm4, %v622_v50 }
 0x3e8   :  { %v623_v51 = vpop.trf.xlu0 }
 0x3e9   :  { %640 = vst.msk [vmem:[#allocation14 + $0x8] sm:$0xff] %vm638_vm4, %v623_v51 }
 0x3ec   :  { %v624_v52 = vpop.trf.xlu0 }
 0x3ed   :  { %641 = vst.msk [vmem:[#allocation14 + $0x10] sm:$0xff] %vm638_vm4, %v624_v52 }
 0x3f0   :  { %v625_v53 = vpop.trf.xlu0 }
 0x3f1   :  { %642 = vst.msk [vmem:[#allocation14 + $0x18] sm:$0xff] %vm638_vm4, %v625_v53 }
 0x3f4   :  { %v626_v54 = vpop.trf.xlu0 }
 0x3f5   :  { %643 = vst.msk [vmem:[#allocation14 + $0x20] sm:$0xff] %vm638_vm4, %v626_v54 }
 0x3f8   :  { %v627_v55 = vpop.trf.xlu0 }
 0x3f9   :  { %644 = vst.msk [vmem:[#allocation14 + $0x28] sm:$0xff] %vm638_vm4, %v627_v55 }
 0x3fc   :  { %v628_v56 = vpop.trf.xlu0 }
 0x3fd   :  { %645 = vst.msk [vmem:[#allocation14 + $0x30] sm:$0xff] %vm638_vm4, %v628_v56 }
 0x400   :  { %v629_v57 = vpop.trf.xlu0 }
 0x401   :  { %646 = vst.msk [vmem:[#allocation14 + $0x38] sm:$0xff] %vm638_vm4, %v629_v57 }
 0x404   :  { %v630_v58 = vpop.trf.xlu0 }
 0x405   :  { %647 = vst.msk [vmem:[#allocation14 + $0x40] sm:$0xff] %vm638_vm4, %v630_v58 }
 0x408   :  { %v631_v59 = vpop.trf.xlu0 }
 0x409   :  { %648 = vst.msk [vmem:[#allocation14 + $0x48] sm:$0xff] %vm638_vm4, %v631_v59 }
 0x40c   :  { %v632_v60 = vpop.trf.xlu0 }
 0x40d   :  { %649 = vst.msk [vmem:[#allocation14 + $0x50] sm:$0xff] %vm638_vm4, %v632_v60 }
 0x410   :  { %v633_v61 = vpop.trf.xlu0 }
 0x411   :  { %650 = vst.msk [vmem:[#allocation14 + $0x58] sm:$0xff] %vm638_vm4, %v633_v61 }
 0x414   :  { %v634_v62 = vpop.trf.xlu0 }
 0x415   :  { %651 = vst.msk [vmem:[#allocation14 + $0x60] sm:$0xff] %vm638_vm4, %v634_v62 }
 0x418   :  { %v635_v63 = vpop.trf.xlu0 }
 0x419   :  { %652 = vst.msk [vmem:[#allocation14 + $0x68] sm:$0xff] %vm638_vm4, %v635_v63 }
 0x41c   :  { %v636_v0 = vpop.trf.xlu0 }
 0x41d   :  { %653 = vst.msk [vmem:[#allocation14 + $0x70] sm:$0xff] %vm638_vm4, %v636_v0 }
 0x420   :  { %v637_v1 = vpop.trf.xlu0 }
 0x421   :  { %654 = vst.msk [vmem:[#allocation14 + $0x78] sm:$0xff] %vm638_vm4, %v637_v1 }
 0x422   :  { %1075 = shalt.err (!%p1072_p4)
}
 0x423   :  { %s1076_s27 = scalar_lea.hbm %s1363_s7, 2048 }
 0x424   :  { %p1077_p5 = scmp.ne.s32.totalorder %s1363_s7, %s1076_s27  ;;  %p1080_p6 = scmp.lt.u32.totalorder %s1076_s27, %s1363_s7 }
 0x426   :  { %p1082_p7 = pnand %p1080_p6, %p1077_p5 }
 0x428   :  { %1085 = shalt.err (!%p1082_p7)
}
 0x429   :  { %666 = dma.vmem_to_hbm [thread:$0]  %s661_s16, 2048, %s1363_s7, [#allocation4], %s1098_s13, %s1098_s13, %s1099_s14  }
 0x42a   :  { %1094 = dma.done.wait [#allocation4], 2048  }
 0x42b   :  { %1095 = vsyncadd [#allocation4], 4294965248 }
 0x42c   :  { %670 = vsyncpa [#allocation3], 1 }
 0x42d   :  { %671 = vsyncpa [#allocation6], 1 }
 0x42e   :  { %672 = vsyncpa [#allocation9], 1 }
 0x42f   :  { %673 = vsyncpa [#allocation12], 1 }
 0x430   :  { %674 = vsyncpa [#allocation4], 1 }

</bundles_post_ra>
